<compile_context>
chip_gen: v7x
topology: tpu7x:2x2x1
jax: 0.10.0
libtpu: 0.0.40
codegen_flags: <defaults>
</compile_context>

<pallas_src>
import jax
import jax.numpy as jnp
from jax.experimental import pallas as pl
from jax.experimental.pallas import tpu as pltpu


def politique_kernel(w1_ref, b1_ref, w2_ref, b2_ref, xT_ref, oT_ref):
    # Transposed compute: hT = relu(W1 @ xT + b1)          (H, TB)
    h = jnp.dot(w1_ref[...], xT_ref[...], preferred_element_type=jnp.float32)
    h = jnp.maximum(h + b1_ref[...], 0.0)

    # logitsT = W2 @ hT + b2                               (O, TB)
    logits = jnp.dot(w2_ref[...], h, preferred_element_type=jnp.float32)
    logits = logits + b2_ref[...]

    # softmax over classes == sublane axis (axis 0), numerically stable
    m = jnp.max(logits, axis=0, keepdims=True)
    e = jnp.exp(logits - m)
    denom = jnp.sum(e, axis=0, keepdims=True)
    oT_ref[...] = e * pl.reciprocal(denom, approx=True)


def politique_forward(x, w1, b1, w2, b2, *, batch_tile=512):
    """x: (B, dim_entree); w1: (H, dim_entree); b1: (H, 1);
    w2: (O, H); b2: (O, 1)  ->  probs (B, O) (softmax over classes)."""
    x = jnp.asarray(x, jnp.float32)
    B, din = x.shape
    H = w1.shape[0]
    O = w2.shape[0]

    # Lane-dense batch tile: multiple of 128, at most `batch_tile`, at least 128.
    tb = max(128, min(int(batch_tile), 128 * pl.cdiv(B, 128)))
    tb = 128 * pl.cdiv(tb, 128)
    Bp = tb * pl.cdiv(B, tb)                      # padded batch
    grid = (Bp // tb,)

    # Pad batch (zero rows produce bias-only softmax rows, sliced off below),
    # then go feature-major: (din, Bp) with batch on the lane axis.
    x_pad = jnp.pad(x, ((0, Bp - B), (0, 0)))
    xT = x_pad.T

    cost = pl.CostEstimate(
        flops=2 * Bp * (din * H + H * O),
        transcendentals=Bp * (O + 1),             # exp per logit + recip per column
        bytes_accessed=4 * (din * Bp + H * din + H + O * H + O + O * Bp),
    )

    def resident(shape):                          # weights/biases stay in VMEM
        return pl.BlockSpec(shape, lambda i: (0, 0), memory_space=pltpu.VMEM)

    outT = pl.pallas_call(
        politique_kernel,
        out_shape=jax.ShapeDtypeStruct((O, Bp), jnp.float32),
        grid=grid,
        in_specs=[
            resident(w1.shape),
            resident(b1.shape),
            resident(w2.shape),
            resident(b2.shape),
            pl.BlockSpec((din, tb), lambda i: (0, i), memory_space=pltpu.VMEM),
        ],
        out_specs=pl.BlockSpec((O, tb), lambda i: (0, i),
                               memory_space=pltpu.VMEM),
        compiler_params=pltpu.CompilerParams(
            dimension_semantics=("parallel",)),
        cost_estimate=cost,
    )(w1, b1, w2, b2, xT)

    return outT[:, :B].T                          # back to (B, O)


def init_params(key, dim_entree, dim_sortie, dim_cachee):
    """nn.Linear-style init U(-1/sqrt(fan_in), 1/sqrt(fan_in)), PyTorch layout."""
    k1, k2, k3, k4 = jax.random.split(key, 4)
    lim1 = 1.0 / jnp.sqrt(jnp.float32(dim_entree))
    lim2 = 1.0 / jnp.sqrt(jnp.float32(dim_cachee))
    w1 = jax.random.uniform(k1, (dim_cachee, dim_entree), jnp.float32, -lim1, lim1)
    b1 = jax.random.uniform(k2, (dim_cachee, 1), jnp.float32, -lim1, lim1)
    w2 = jax.random.uniform(k3, (dim_sortie, dim_cachee), jnp.float32, -lim2, lim2)
    b2 = jax.random.uniform(k4, (dim_sortie, 1), jnp.float32, -lim2, lim2)
    return w1, b1, w2, b2


def reference_forward(x, w1, b1, w2, b2):
    h = jnp.maximum(x @ w1.T + b1.T, 0.0)
    logits = h @ w2.T + b2.T
    return jax.nn.softmax(logits, axis=1)


if __name__ == "__main__":
    # CartPole-sized problem: obs dim 4, 2 actions, hidden 32.
    dim_entree, dim_sortie, dim_cachee = 4, 2, 32
    batch = 2

    key = jax.random.PRNGKey(0)
    kx, kp, kb = jax.random.split(key, 3)
    w1, b1, w2, b2 = init_params(kp, dim_entree, dim_sortie, dim_cachee)

    # Small (CartPole) batch — single 128-wide lane tile, one grid step.
    x = jax.random.normal(kx, (batch, dim_entree), dtype=jnp.float32)
    probs = jax.block_until_ready(politique_forward(x, w1, b1, w2, b2))
    probs_ref = reference_forward(x, w1, b1, w2, b2)
    assert probs.shape == (batch, dim_sortie)
    assert jnp.allclose(probs, probs_ref, atol=2e-3, rtol=2e-3)
    assert jnp.allclose(jnp.sum(probs, axis=1), 1.0, atol=2e-3)

    # Batched path (many envs/timesteps per call): multiple lane-dense batch
    # tiles, weights resident across the parallel grid axis.
    x_big = jax.random.normal(kb, (1000, dim_entree), dtype=jnp.float32)
    probs_big = jax.block_until_ready(politique_forward(x_big, w1, b1, w2, b2))
    probs_big_ref = reference_forward(x_big, w1, b1, w2, b2)
    assert probs_big.shape == (1000, dim_sortie)
    assert jnp.allclose(probs_big, probs_big_ref, atol=2e-3, rtol=2e-3)

    # TODO(synk): Politique.action()'s Categorical sampling / log_prob is host-side
    # control logic, not part of forward(), and is intentionally not in the kernel.
    print("KERNEL_OK")
</pallas_src>

<mosaic_0001>
module attributes {stable_mosaic.version = 11 : i64} {
  func.func @politique_kernel(%arg0: i32, %arg1: memref<32x4xf32, #tpu.memory_space<vmem>>, %arg2: memref<32x1xf32, #tpu.memory_space<vmem>>, %arg3: memref<2x32xf32, #tpu.memory_space<vmem>>, %arg4: memref<2x1xf32, #tpu.memory_space<vmem>>, %arg5: memref<4x128xf32, #tpu.memory_space<vmem>>, %arg6: memref<2x128xf32, #tpu.memory_space<vmem>>) attributes {dimension_semantics = [#tpu.dimension_semantics<parallel>], iteration_bounds = array<i64: 1>, scalar_prefetch = 0 : i64, scratch_operands = 0 : i64, tpu.core_type = #tpu.core_type<tc>, window_params = [{pipeline_mode = #tpu.pipeline_mode<synchronous>, transform_indices = @transform_0, window_bounds = array<i64: 32, 4>}, {pipeline_mode = #tpu.pipeline_mode<synchronous>, transform_indices = @transform_1, window_bounds = array<i64: 32, 1>}, {pipeline_mode = #tpu.pipeline_mode<synchronous>, transform_indices = @transform_2, window_bounds = array<i64: 2, 32>}, {pipeline_mode = #tpu.pipeline_mode<synchronous>, transform_indices = @transform_3, window_bounds = array<i64: 2, 1>}, {transform_indices = @transform_4, window_bounds = array<i64: 4, 128>}, {transform_indices = @transform_5, window_bounds = array<i64: 2, 128>}]} {
    %c0 = arith.constant 0 : index
    %c0_0 = arith.constant 0 : index
    %0 = vector.load %arg1[%c0, %c0_0] : memref<32x4xf32, #tpu.memory_space<vmem>>, vector<32x4xf32>
    %c0_1 = arith.constant 0 : index
    %c0_2 = arith.constant 0 : index
    %1 = vector.load %arg5[%c0_1, %c0_2] : memref<4x128xf32, #tpu.memory_space<vmem>>, vector<4x128xf32>
    %cst = arith.constant dense<0.000000e+00> : vector<32x128xf32>
    %2 = tpu.matmul %0, %1, %cst {dimension_numbers = #tpu.dot_dimension_numbers<[1], [0], [0], [1], [0, 0, 1, 1], [], []>} : vector<32x4xf32>, vector<4x128xf32>, vector<32x128xf32> -> vector<32x128xf32>
    %c0_3 = arith.constant 0 : index
    %c0_4 = arith.constant 0 : index
    %3 = vector.load %arg2[%c0_3, %c0_4] : memref<32x1xf32, #tpu.memory_space<vmem>>, vector<32x1xf32>
    %4 = vector.broadcast %3 : vector<32x1xf32> to vector<32x128xf32>
    %5 = arith.addf %2, %4 : vector<32x128xf32>
    %cst_5 = arith.constant 0.000000e+00 : f32
    %6 = vector.broadcast %cst_5 : f32 to vector<32x128xf32>
    %7 = arith.maximumf %5, %6 : vector<32x128xf32>
    %c0_6 = arith.constant 0 : index
    %c0_7 = arith.constant 0 : index
    %8 = vector.load %arg3[%c0_6, %c0_7] : memref<2x32xf32, #tpu.memory_space<vmem>>, vector<2x32xf32>
    %cst_8 = arith.constant dense<0.000000e+00> : vector<2x128xf32>
    %9 = tpu.matmul %8, %7, %cst_8 {dimension_numbers = #tpu.dot_dimension_numbers<[1], [0], [0], [1], [0, 0, 1, 1], [], []>} : vector<2x32xf32>, vector<32x128xf32>, vector<2x128xf32> -> vector<2x128xf32>
    %c0_9 = arith.constant 0 : index
    %c0_10 = arith.constant 0 : index
    %10 = vector.load %arg4[%c0_9, %c0_10] : memref<2x1xf32, #tpu.memory_space<vmem>>, vector<2x1xf32>
    %11 = vector.broadcast %10 : vector<2x1xf32> to vector<2x128xf32>
    %12 = arith.addf %9, %11 : vector<2x128xf32>
    %cst_11 = arith.constant dense<0xFF800000> : vector<128xf32>
    %13 = vector.multi_reduction <maximumf>, %12, %cst_11 [0] : vector<2x128xf32> to vector<128xf32>
    %14 = vector.shape_cast %13 : vector<128xf32> to vector<1x128xf32>
    %15 = vector.broadcast %14 : vector<1x128xf32> to vector<2x128xf32>
    %16 = arith.subf %12, %15 : vector<2x128xf32>
    %17 = math.exp %16 : vector<2x128xf32>
    %cst_12 = arith.constant dense<0.000000e+00> : vector<128xf32>
    %18 = vector.multi_reduction <add>, %17, %cst_12 [0] : vector<2x128xf32> to vector<128xf32>
    %19 = vector.shape_cast %18 : vector<128xf32> to vector<1x128xf32>
    %20 = tpu.reciprocal %19 {approx = true} : vector<1x128xf32> -> vector<1x128xf32>
    %21 = vector.broadcast %20 : vector<1x128xf32> to vector<2x128xf32>
    %22 = arith.mulf %17, %21 : vector<2x128xf32>
    %c0_13 = arith.constant 0 : index
    %c0_14 = arith.constant 0 : index
    %23 = vector.load %arg6[%c0_13, %c0_14] : memref<2x128xf32, #tpu.memory_space<vmem>>, vector<2x128xf32>
    tpu.vector_store %arg6[%c0_13, %c0_14], %22 {strides = array<i32>} : memref<2x128xf32, #tpu.memory_space<vmem>>, vector<2x128xf32>,
    return
  }
  func.func @transform_0(%arg0: i32) -> (i32, i32) {
    %c0_i32 = arith.constant 0 : i32
    %c0_i32_0 = arith.constant 0 : i32
    %c0_i32_1 = arith.constant 0 : i32
    return %c0_i32, %c0_i32_0 : i32, i32
  }
  func.func @transform_1(%arg0: i32) -> (i32, i32) {
    %c0_i32 = arith.constant 0 : i32
    %c0_i32_0 = arith.constant 0 : i32
    %c0_i32_1 = arith.constant 0 : i32
    return %c0_i32, %c0_i32_0 : i32, i32
  }
  func.func @transform_2(%arg0: i32) -> (i32, i32) {
    %c0_i32 = arith.constant 0 : i32
    %c0_i32_0 = arith.constant 0 : i32
    %c0_i32_1 = arith.constant 0 : i32
    return %c0_i32, %c0_i32_0 : i32, i32
  }
  func.func @transform_3(%arg0: i32) -> (i32, i32) {
    %c0_i32 = arith.constant 0 : i32
    %c0_i32_0 = arith.constant 0 : i32
    %c0_i32_1 = arith.constant 0 : i32
    return %c0_i32, %c0_i32_0 : i32, i32
  }
  func.func @transform_4(%arg0: i32) -> (i32, i32) {
    %c0_i32 = arith.constant 0 : i32
    %c0_i32_0 = arith.constant 0 : i32
    return %c0_i32, %arg0 : i32, i32
  }
  func.func @transform_5(%arg0: i32) -> (i32, i32) {
    %c0_i32 = arith.constant 0 : i32
    %c0_i32_0 = arith.constant 0 : i32
    return %c0_i32, %arg0 : i32, i32
  }
}

</mosaic_0001>

<bundles_post_ra>
// kernel: tpu_custom_call.1
= control target key start
LH: loop header
LB: loop body
LE: loop exit
PB: predicated region body
PF: predicated region fallthrough
CT: control target
= control target key end

     0   :  { %vm63_vm0 = vcmask 1043456   ;;  %vm50_vm1 = vcmask 31744   ;;  %v348_v5 = vmov 0   ;;  %s432_s0 = inlined_call_operand.vmem [shape: f32[32,4], index: 0, kind: input, shape index: {}]   ;;  %s433_s1 = inlined_call_operand.vmem [shape: f32[32,1], index: 1, kind: input, shape index: {}]   ;;  %s434_s2 = inlined_call_operand.vmem [shape: f32[2,32], index: 2, kind: input, shape index: {}]   ;;  %s435_s3 = inlined_call_operand.vmem [shape: f32[2,1], index: 3, kind: input, shape index: {}]   ;;  %s436_s4 = inlined_call_operand.vmem [shape: f32[4,128], index: 4, kind: input, shape index: {}]   ;;  %s437_s5 = inlined_call_operand.hbm [shape: f32[2,128], index: 5, kind: output, shape index: {}]  }
   0x1   :  { %v25_v0 = vld [vmem:[%s436_s4] sm:$0xf]  ;;  %v22_v2 = vld [vmem:[%s432_s0 + $0x8] sm:$0xff]  ;;  %v23_v3 = vld [vmem:[%s432_s0 + $0x10] sm:$0xff]  ;;  %318 = vset.pattern.permute.xlu0 %v348_v5 }
   0x2   :  { %v21_v1 = vld [vmem:[%s432_s0] sm:$0xff]  ;;  %288 = vmatprep.subr.msk.mxu0 %vm63_vm0, %v25_v0  ;;  %v28_v6 = vld [vmem:[%s433_s1 + $0x10] sm:$0xff] }
   0x3   :  { %290 = vmatprep.mubr.msk.f32.mxu0 %vm50_vm1, %v21_v1  ;;  %v26_v4 = vld [vmem:[%s433_s1] sm:$0xff]  ;;  %289 = vmatpush3.msk.msra.mxu0 %vm63_vm0, %v25_v0 }
   0x4   :  { %291 = vmatmul.mubr.msk.f32.vlgmr.msra.gmra.mrb[0].mxu0 %vm50_vm1, %v22_v2  ;;  %32 = vperm.xlu0 %318, %v26_v4  }
   0x5   :  { %10 = vsyncpa [#allocation3], 0  ;;  %293 = vmatprep.mubr.msk.f32.mxu0 %vm50_vm1, %v23_v3  ;;  %v24_v7 = vld [vmem:[%s432_s0 + $0x18] sm:$0xff]  ;;  %v27_v8 = vld [vmem:[%s433_s1 + $0x8] sm:$0xff]  ;;  %319 = vset.pattern.permute.xlu1 %v348_v5  ;;  %v349_v11 = vmov 0.0|0.0   ;;  %vm350_vm2 = vmmov 0  }
   0x6   :  { %42 = vperm.xlu1 %319, %v28_v6   ;;  %v29_v9 = vld [vmem:[%s433_s1 + $0x18] sm:$0xff]  ;;  %v157_v10 = vld [vmem:[%s435_s3] sm:$0x3]  ;;  %307 = vmatprep.subr.bf16.mxu1 %v349_v11  ;;  %v351_v12 = vmov 0.0   ;;  %vm163_vm3 = vcmask 261120   ;;  %vm237_vm4 = vcmask 1041408  }
   0x7   :  { %304 = vmatprep.mubr.msk.f32.mxu1 %vm350_vm2, %v351_v12  ;;  %v156_v31 = vld [vmem:[%s434_s2] sm:$0x3]  ;;  %s352_s2 = smov [#allocation2]  }
   0x8   :  { %294 = vmatmul.mubr.msk.f32.gmra.mrb[2].mxu0 %vm50_vm1, %v24_v7  ;;  %37 = vperm.xlu0 %318, %v27_v8   ;;  %s264_s3 = sshll.u32 %s352_s2, 4  ;;  %s265_s3 = int_to_ptr.vmem [resolvable:$true] %s264_s3 }
   0x9   :  { %s324_s12 = scalar_lea.vmem %s265_s3, 32  ;;  %p329_p1 = scmp.lt.s32.totalorder %s265_s3, %s265_s3 }
   0xa   :  { %47 = vperm.xlu1 %319, %v29_v9   ;;  %p325_p0 = scmp.ne.s32.totalorder %s265_s3, %s324_s12  ;;  %p330_p2 = scmp.lt.s32.totalorder %s324_s12, %s324_s12 }
   0xc   :  { %160 = vperm.xlu0 %318, %v157_v10   ;;  %p331_p3 = por %p330_p2, %p329_p1 }
   0xe   :  { %p332_p4 = pnand %p331_p3, %p325_p0 }
  0x83   :  { %v33_v13 = vpop.permute.xlu0 %32 }
  0x85   :  { %v43_v14 = vpop.permute.xlu1 %42 }
  0x87   :  { %v38_v15 = vpop.permute.xlu0 %37 }
  0x89   :  { %v48_v21 = vpop.permute.xlu1 %47 }
  0x8b   :  { %v161_v32 = vpop.permute.xlu0 %160 }
  0xd7   :  { %v292_v16 = vpop.f32.mrb[0].mxu0 }
  0xd8   :  { %v139_v17 = vadd.f32 %v292_v16, %v38_v15  ;;  %v133_v18 = vpop.f32.mrb[1].mxu0 }
  0xd9   :  { %v134_v19 = vadd.f32 %v133_v18, %v33_v13 }
  0xda   :  { %v153_v20 = vmax.f32 %v139_v17, 0.0 }
  0xdb   :  { %v152_v22 = vmax.f32 %v134_v19, 0.0  ;;  %v295_v23 = vpop.f32.mrb[2].mxu0 }
  0xdc   :  { %v149_v24 = vadd.f32 %v295_v23, %v48_v21  ;;  %v143_v25 = vpop.f32.mrb[3].mxu0 }
  0xdd   :  { %v144_v26 = vadd.f32 %v143_v25, %v43_v14  ;;  %v308_v27 = vpack.c.bf16 %v153_v20, %v152_v22 }
  0xde   :  { %v155_v28 = vmax.f32 %v149_v24, 0.0 }
  0xdf   :  { %v154_v29 = vmax.f32 %v144_v26, 0.0  ;;  %309 = vmatpush3.bf16.msra.mxu1 %v308_v27 }
  0xe0   :  { %310 = vmatprep.subr.bf16.mxu1 %v349_v11 }
  0xe1   :  { %v311_v30 = vpack.c.bf16 %v155_v28, %v154_v29 }
  0xe3   :  { %312 = vmatpush3.bf16.msra.mxu1 %v311_v30 }
  0xe6   :  { %305 = vmatmul.mubr.msk.f32.vlgmr.msra.gmra.mrb[0].mxu1 %vm163_vm3, %v156_v31 }
 0x1b9   :  { %v233_v33 = vpop.f32.mrb[0].mxu1 }
 0x1ba   :  { %v234_v34 = vadd.f32 %v233_v33, %v161_v32  ;;  %v306_v35 = vpop.f32.mrb[1].mxu1 }
 0x1bc   :  { %v238_v36 = vsel %vm237_vm4, %v234_v34, -inf }
 0x1bd   :  { %v239_v37 = vrot.slane %v238_v36, 4 }
 0x1bf   :  { %v240_v38 = vmax.f32 %v238_v36, %v239_v37 }
 0x1c1   :  { %v241_v39 = vrot.slane %v240_v38, 2 }
 0x1c3   :  { %v242_v40 = vmax.f32 %v240_v38, %v241_v39 }
 0x1c5   :  { %v243_v41 = vrot.slane %v242_v40, 1 }
 0x1c7   :  { %v244_v42 = vmax.f32 %v242_v40, %v243_v41 }
 0x1c9   :  { %v245_v43 = vsub.f32 %v234_v34, %v244_v42 }
 0x1cb   :  { %v246_v44 = vmul.f32 1.442695, %v245_v43 }
 0x1cd   :  { %320 = vpow2.f32 %v246_v44 }
 0x1d7   :  { %v321_v45 = vpop.eup %320 }
 0x1d8   :  { %v248_v46 = vsel %vm237_vm4, %v321_v45, 0.0 }
 0x1d9   :  { %v249_v47 = vrot.slane %v248_v46, 4 }
 0x1db   :  { %v250_v48 = vadd.f32 %v249_v47, %v248_v46 }
 0x1dd   :  { %v251_v49 = vrot.slane %v250_v48, 2 }
 0x1df   :  { %v252_v50 = vadd.f32 %v251_v49, %v250_v48 }
 0x1e1   :  { %v253_v51 = vrot.slane %v252_v50, 1 }
 0x1e3   :  { %v254_v52 = vadd.f32 %v253_v51, %v252_v50 }
 0x1e5   :  { %322 = vrcp.f32 %v254_v52 }
 0x1ef   :  { %v323_v53 = vpop.eup %322 }
 0x1f0   :  { %v256_v54 = vmul.f32 %v323_v53, %v321_v45 }
 0x1f2   :  { %257 = vst [vmem:[#allocation2] sm:$0x3] %v256_v54 }
 0x1f3   :  { %335 = shalt.err (!%p332_p4)
}
 0x1f4   :  { %s336_s15 = scalar_lea.hbm %s437_s5, 32 }
 0x1f5   :  { %p337_p5 = scmp.ne.s32.totalorder %s437_s5, %s336_s15  ;;  %p340_p6 = scmp.lt.u32.totalorder %s336_s15, %s437_s5 }
 0x1f7   :  { %p342_p7 = pnand %p340_p6, %p337_p5 }
 0x1f9   :  { %345 = shalt.err (!%p342_p7)
}
 0x1fa   :  { %267 = dma.vmem_to_hbm [thread:$0]  %s265_s3, 32, %s437_s5, [#allocation3]  }
 0x1fb   :  { %346 = dma.done.wait [#allocation3], 32  }
 0x1fc   :  { %347 = vsyncadd [#allocation3], 4294967264 }
 0x1fd   :  { %271 = vsyncpa [#allocation3], 1 }

</bundles_post_ra>
